<compile_context>
chip_gen: v5e
topology: v5e:2x2
jax: 0.10.0
libtpu: 0.0.40
codegen_flags: <defaults>
</compile_context>

<pallas_src>
import jax
import jax.numpy as jnp
from jax import lax
from jax.experimental import pallas as pl
from jax.experimental.pallas import tpu as pltpu

LANE = 128
TV_MAX = 2048          # max streamed vocab-tile width (lanes)


def _round_up(x, m):
    return (x + m - 1) // m * m


def _cdiv(a, b):
    return -(-a // b)


# ----------------------------------------------------------------------------- kernel
def decoder_kernel(x_ref, h0_ref, c0_ref, enc_ref,
                   wih_ref, whh_ref, b_ref, wattn_ref, wout_ref, bout_ref,
                   logits_ref, norm_ref, ctx_ref, h1_ref, c1_ref,
                   h_sc, m_sc, l_sc):
    j = pl.program_id(0)
    nj = pl.num_programs(0)
    Hp = h0_ref.shape[1]

    # ---- first vocab tile only: LSTM cell + attention + context -------------
    @pl.when(j == 0)
    def _():
        x = x_ref[...].astype(jnp.bfloat16)                       # (1, Kx)
        h0 = h0_ref[...]                                          # (1, Hp) f32
        c0 = c0_ref[...]                                          # (1, Hp) f32

        # LSTM gates (PyTorch order i, f, g, o); gate blocks are Hp-aligned.
        gates = (jnp.dot(x, wih_ref[...], preferred_element_type=jnp.float32)
                 + jnp.dot(h0.astype(jnp.bfloat16), whh_ref[...],
                           preferred_element_type=jnp.float32)
                 + b_ref[...])                                    # (1, 4*Hp)
        i_g = jax.nn.sigmoid(gates[:, 0 * Hp:1 * Hp])
        f_g = jax.nn.sigmoid(gates[:, 1 * Hp:2 * Hp])
        g_g = jnp.tanh(gates[:, 2 * Hp:3 * Hp])
        o_g = jax.nn.sigmoid(gates[:, 3 * Hp:4 * Hp])
        c1 = f_g * c0 + i_g * g_g                                 # (1, Hp)
        h1 = o_g * jnp.tanh(c1)                                   # (1, Hp)

        # Attention (Luong "general"):  energy_s = h1 . (W_a e_s) = (h1 @ W_a) . e_s
        # (b_attn is constant over s and cancels in the softmax -> dropped)
        enc = enc_ref[...]                                        # (S, Hp) f32
        q = jnp.dot(h1.astype(jnp.bfloat16), wattn_ref[...],
                    preferred_element_type=jnp.float32)           # (1, Hp)
        energies = lax.dot_general(q, enc, (((1,), (1,)), ((), ())),
                                   preferred_element_type=jnp.float32)  # (1, S)
        e_max = jnp.max(energies, axis=-1, keepdims=True)
        e_exp = jnp.exp(energies - e_max)
        attn_w = e_exp / jnp.sum(e_exp, axis=-1, keepdims=True)   # (1, S)
        ctx = jnp.dot(attn_w, enc, preferred_element_type=jnp.float32)  # (1, Hp)

        h_sc[...] = h1.astype(jnp.bfloat16)                       # cast once, reuse
        m_sc[...] = jnp.full(m_sc.shape, -jnp.inf, jnp.float32)
        l_sc[...] = jnp.zeros(l_sc.shape, jnp.float32)
        h1_ref[...] = h1
        c1_ref[...] = c1
        ctx_ref[...] = ctx

    # ---- every vocab tile: streamed output projection + online logsumexp ----
    h1b = h_sc[...]                                               # (1, Hp) bf16
    logits = (jnp.dot(h1b, wout_ref[...], preferred_element_type=jnp.float32)
              + bout_ref[...])                                    # (1, TV)
    logits_ref[...] = logits                                      # raw logits tile

    t_max = jnp.max(logits, axis=-1, keepdims=True)               # (1, 1)
    m_old = m_sc[...]
    m_new = jnp.maximum(m_old, t_max)
    l_sc[...] = (l_sc[...] * jnp.exp(m_old - m_new)
                 + jnp.sum(jnp.exp(logits - m_new), axis=-1, keepdims=True))
    m_sc[...] = m_new

    @pl.when(j == nj - 1)
    def _():
        norm_ref[...] = m_sc[...] + jnp.log(l_sc[...])            # logsumexp over V


# ----------------------------------------------------------------------------- prep (once)
def prepare_params(params):
    """One-time preprocessing (call ONCE, outside the decode loop):
    pad to lane-aligned shapes, pre-transpose matmul weights to [in, out],
    re-pack LSTM gate blocks on 128-lane boundaries, fuse biases, cast to bf16."""
    f32, bf16 = jnp.float32, jnp.bfloat16
    V, E = params["embedding"].shape
    H = params["w_hh"].shape[1]
    Hp = _round_up(H, LANE)
    Kx = _round_up(E + H, LANE)

    # padding-minimizing vocab tile up to TV_MAX lanes
    n_tiles = max(1, _cdiv(V, TV_MAX))
    TV = _round_up(_cdiv(V, n_tiles), LANE)
    Vp = n_tiles * TV

    w_ih_t = jnp.zeros((Kx, 4 * Hp), f32)
    w_hh_t = jnp.zeros((Hp, 4 * Hp), f32)
    bias = jnp.zeros((1, 4 * Hp), f32)
    b_fused = params["b_ih"] + params["b_hh"]
    for g in range(4):                      # torch gate order i, f, g, o
        w_ih_t = w_ih_t.at[:E + H, g * Hp:g * Hp + H].set(
            params["w_ih"][g * H:(g + 1) * H, :].T)
        w_hh_t = w_hh_t.at[:H, g * Hp:g * Hp + H].set(
            params["w_hh"][g * H:(g + 1) * H, :].T)
        bias = bias.at[0, g * Hp:g * Hp + H].set(b_fused[g * H:(g + 1) * H])

    w_attn = jnp.zeros((Hp, Hp), f32).at[:H, :H].set(params["w_attn"])   # torch (out,in)
    w_out_t = jnp.zeros((Hp, Vp), f32).at[:H, :V].set(params["w_out"].T)
    b_out = jnp.full((1, Vp), -1e30, f32).at[0, :V].set(params["b_out"])

    return {
        "H": H, "E": E, "V": V, "Hp": Hp, "Kx": Kx, "TV": TV, "Vp": Vp,
        "embedding": params["embedding"].astype(bf16),
        "w_ih_t": w_ih_t.astype(bf16),
        "w_hh_t": w_hh_t.astype(bf16),
        "bias": bias,
        "w_attn": w_attn.astype(bf16),
        "w_out_t": w_out_t.astype(bf16),
        "b_out": b_out,
    }


def _vmem_limit_bytes(S, Hp, Kx, TV):
    resident = ((Kx * 4 * Hp + Hp * 4 * Hp + Hp * Hp) * 2            # bf16 weights
                + (4 * Hp + Kx + 3 * Hp + S * Hp + 3 * Hp + 8) * 4)  # f32 acts/bias/outs
    streamed = 2 * (Hp * TV * 2 + TV * 4 + TV * 4)                   # double-buffered tiles
    est = resident + streamed + (1 << 20)
    # headroom, capped to stay safe on v7x (64 MiB physical VMEM per TC)
    return int(min(60 * 2 ** 20, max(16 * 2 ** 20, est + (est >> 1))))


# ----------------------------------------------------------------------------- forward
def decoder_forward(prep, word_input, last_context, last_hidden, encoder_outputs):
    """Mirror of Decoder.forward (single decode step).
    word_input: int32 token id; last_context: (1,H); last_hidden: ((1,1,H),(1,1,H));
    encoder_outputs: (S,1,H).  Returns (output (1,V), context (1,H), hidden)."""
    H, Hp, E, Kx = prep["H"], prep["Hp"], prep["E"], prep["Kx"]
    V, Vp, TV = prep["V"], prep["Vp"], prep["TV"]
    S = encoder_outputs.shape[0]
    f32 = jnp.float32

    # glue: embedding gather + concat with last context, zero-padded to lane widths
    emb = prep["embedding"][word_input].astype(f32).reshape(1, E)
    x = jnp.zeros((1, Kx), f32).at[:, :E].set(emb).at[:, E:E + H].set(
        last_context.astype(f32))
    h0 = jnp.zeros((1, Hp), f32).at[:, :H].set(last_hidden[0].reshape(1, H))
    c0 = jnp.zeros((1, Hp), f32).at[:, :H].set(last_hidden[1].reshape(1, H))
    enc = jnp.zeros((S, Hp), f32).at[:, :H].set(encoder_outputs.reshape(S, H))

    n_tiles = Vp // TV
    grid_spec = pltpu.PrefetchScalarGridSpec(
        num_scalar_prefetch=0,
        grid=(n_tiles,),
        in_specs=[
            pl.BlockSpec((1, Kx), lambda j: (0, 0)),        # x           (resident)
            pl.BlockSpec((1, Hp), lambda j: (0, 0)),        # h0          (resident)
            pl.BlockSpec((1, Hp), lambda j: (0, 0)),        # c0          (resident)
            pl.BlockSpec((S, Hp), lambda j: (0, 0)),        # encoder out (resident)
            pl.BlockSpec((Kx, 4 * Hp), lambda j: (0, 0)),   # w_ih^T      (resident)
            pl.BlockSpec((Hp, 4 * Hp), lambda j: (0, 0)),   # w_hh^T      (resident)
            pl.BlockSpec((1, 4 * Hp), lambda j: (0, 0)),    # fused bias  (resident)
            pl.BlockSpec((Hp, Hp), lambda j: (0, 0)),       # w_attn      (resident)
            pl.BlockSpec((Hp, TV), lambda j: (0, j)),       # w_out^T     (streamed tiles)
            pl.BlockSpec((1, TV), lambda j: (0, j)),        # b_out       (streamed tiles)
        ],
        out_specs=(
            pl.BlockSpec((1, TV), lambda j: (0, j)),        # raw logits tiles
            pl.BlockSpec((1, 1), lambda j: (0, 0)),         # logsumexp
            pl.BlockSpec((1, Hp), lambda j: (0, 0)),        # context
            pl.BlockSpec((1, Hp), lambda j: (0, 0)),        # h'
            pl.BlockSpec((1, Hp), lambda j: (0, 0)),        # c'
        ),
        scratch_shapes=[
            pltpu.VMEM((1, Hp), jnp.bfloat16),              # h1 (bf16, cast once)
            pltpu.VMEM((1, 1), jnp.float32),                # running max
            pltpu.VMEM((1, 1), jnp.float32),                # running sum(exp)
        ],
    )
    out_shapes = (
        jax.ShapeDtypeStruct((1, Vp), jnp.float32),
        jax.ShapeDtypeStruct((1, 1), jnp.float32),
        jax.ShapeDtypeStruct((1, Hp), jnp.float32),
        jax.ShapeDtypeStruct((1, Hp), jnp.float32),
        jax.ShapeDtypeStruct((1, Hp), jnp.float32),
    )

    raw, norm, ctx, h1, c1 = pl.pallas_call(
        decoder_kernel,
        out_shape=out_shapes,
        grid_spec=grid_spec,
        compiler_params=pltpu.CompilerParams(
            dimension_semantics=("arbitrary",),
            vmem_limit_bytes=_vmem_limit_bytes(S, Hp, Kx, TV)),
    )(x, h0, c0, enc,
      prep["w_ih_t"], prep["w_hh_t"], prep["bias"], prep["w_attn"],
      prep["w_out_t"], prep["b_out"])

    # second (cheap) pass of log_softmax: subtract the in-kernel logsumexp
    output = raw[:, :V] - norm
    context = ctx[:, :H]
    hidden = (h1[:, :H].reshape(1, 1, H), c1[:, :H].reshape(1, 1, H))
    return output, context, hidden


# ----------------------------------------------------------------------------- reference & init
def decoder_reference(params, word_input, last_context, last_hidden, encoder_outputs):
    """Pure-JAX reference (weights rounded through bf16 like the kernel stores them)."""
    rt = lambda w: w.astype(jnp.bfloat16).astype(jnp.float32)
    H = last_context.shape[1]
    S = encoder_outputs.shape[0]
    emb = rt(params["embedding"])[word_input].reshape(1, -1)
    x = jnp.concatenate([emb, last_context], axis=1)
    h0 = last_hidden[0].reshape(1, H)
    c0 = last_hidden[1].reshape(1, H)
    gates = (x @ rt(params["w_ih"]).T + h0 @ rt(params["w_hh"]).T
             + params["b_ih"] + params["b_hh"])
    i_g = jax.nn.sigmoid(gates[:, 0 * H:1 * H])
    f_g = jax.nn.sigmoid(gates[:, 1 * H:2 * H])
    g_g = jnp.tanh(gates[:, 2 * H:3 * H])
    o_g = jax.nn.sigmoid(gates[:, 3 * H:4 * H])
    c1 = f_g * c0 + i_g * g_g
    h1 = o_g * jnp.tanh(c1)
    enc = encoder_outputs.reshape(S, H)
    proj = enc @ rt(params["w_attn"]).T + params["b_attn"]   # bias kept: cancels in softmax
    attn = jax.nn.softmax(h1 @ proj.T, axis=-1)
    ctx = attn @ enc
    out = jax.nn.log_softmax(h1 @ rt(params["w_out"]).T + params["b_out"], axis=-1)
    return out, ctx, (h1.reshape(1, 1, H), c1.reshape(1, 1, H))


def init_params(key, hidden_size, embedding_size, output_size):
    ks = jax.random.split(key, 10)
    s = 0.1
    return {
        "embedding": s * jax.random.normal(ks[0], (output_size, embedding_size), jnp.float32),
        "w_ih": s * jax.random.normal(ks[1], (4 * hidden_size, embedding_size + hidden_size), jnp.float32),
        "w_hh": s * jax.random.normal(ks[2], (4 * hidden_size, hidden_size), jnp.float32),
        "b_ih": s * jax.random.normal(ks[3], (4 * hidden_size,), jnp.float32),
        "b_hh": s * jax.random.normal(ks[4], (4 * hidden_size,), jnp.float32),
        "w_attn": s * jax.random.normal(ks[5], (hidden_size, hidden_size), jnp.float32),
        "b_attn": s * jax.random.normal(ks[6], (hidden_size,), jnp.float32),
        "w_out": s * jax.random.normal(ks[7], (output_size, hidden_size), jnp.float32),
        "b_out": s * jax.random.normal(ks[8], (output_size,), jnp.float32),
    }


if __name__ == "__main__":
    hidden_size, embedding_size, output_size, seq_len = 32, 16, 20, 8

    key = jax.random.PRNGKey(0)
    pkey, k1, k2, k3, k4 = jax.random.split(key, 5)
    params = init_params(pkey, hidden_size, embedding_size, output_size)
    prep = prepare_params(params)          # one-time weight prep (outside decode loop)

    word_input = jnp.array(3, dtype=jnp.int32)
    last_context = jax.random.normal(k1, (1, hidden_size), jnp.float32)
    last_hidden = (
        jax.random.normal(k2, (1, 1, hidden_size), jnp.float32),
        jax.random.normal(k3, (1, 1, hidden_size), jnp.float32),
    )
    encoder_outputs = jax.random.normal(k4, (seq_len, 1, hidden_size), jnp.float32)

    output, context, hidden = decoder_forward(
        prep, word_input, last_context, last_hidden, encoder_outputs)
    jax.block_until_ready((output, context, hidden))

    assert output.shape == (1, output_size)
    assert context.shape == (1, hidden_size)
    assert hidden[0].shape == (1, 1, hidden_size) and hidden[1].shape == (1, 1, hidden_size)

    ref_out, ref_ctx, ref_hidden = decoder_reference(
        params, word_input, last_context, last_hidden, encoder_outputs)
    assert bool(jnp.all(jnp.isfinite(output)))
    assert bool(jnp.allclose(output, ref_out, atol=3e-2)), "log-softmax output mismatch"
    assert bool(jnp.allclose(context, ref_ctx, atol=3e-2)), "context mismatch"
    assert bool(jnp.allclose(hidden[0], ref_hidden[0], atol=3e-2)), "h mismatch"
    assert bool(jnp.allclose(hidden[1], ref_hidden[1], atol=3e-2)), "c mismatch"

    print("KERNEL_OK")
</pallas_src>

<mosaic_0001>
module attributes {stable_mosaic.version = 11 : i64} {
  func.func @decoder_kernel(%arg0: i32, %arg1: memref<1x128xf32, #tpu.memory_space<vmem>>, %arg2: memref<1x128xf32, #tpu.memory_space<vmem>>, %arg3: memref<1x128xf32, #tpu.memory_space<vmem>>, %arg4: memref<8x128xf32, #tpu.memory_space<vmem>>, %arg5: memref<128x512xbf16, #tpu.memory_space<vmem>>, %arg6: memref<128x512xbf16, #tpu.memory_space<vmem>>, %arg7: memref<1x512xf32, #tpu.memory_space<vmem>>, %arg8: memref<128x128xbf16, #tpu.memory_space<vmem>>, %arg9: memref<128x128xbf16, #tpu.memory_space<vmem>>, %arg10: memref<1x128xf32, #tpu.memory_space<vmem>>, %arg11: memref<1x128xf32, #tpu.memory_space<vmem>>, %arg12: memref<1x1xf32, #tpu.memory_space<vmem>>, %arg13: memref<1x128xf32, #tpu.memory_space<vmem>>, %arg14: memref<1x128xf32, #tpu.memory_space<vmem>>, %arg15: memref<1x128xf32, #tpu.memory_space<vmem>>, %arg16: memref<1x128xbf16, #tpu.memory_space<vmem>>, %arg17: memref<1x1xf32, #tpu.memory_space<vmem>>, %arg18: memref<1x1xf32, #tpu.memory_space<vmem>>) attributes {dimension_semantics = [#tpu.dimension_semantics<arbitrary>], iteration_bounds = array<i64: 1>, scalar_prefetch = 0 : i64, scratch_operands = 3 : i64, tpu.core_type = #tpu.core_type<tc>, window_params = [{pipeline_mode = #tpu.pipeline_mode<synchronous>, transform_indices = @transform_0, window_bounds = array<i64: 1, 128>}, {pipeline_mode = #tpu.pipeline_mode<synchronous>, transform_indices = @transform_1, window_bounds = array<i64: 1, 128>}, {pipeline_mode = #tpu.pipeline_mode<synchronous>, transform_indices = @transform_2, window_bounds = array<i64: 1, 128>}, {pipeline_mode = #tpu.pipeline_mode<synchronous>, transform_indices = @transform_3, window_bounds = array<i64: 8, 128>}, {pipeline_mode = #tpu.pipeline_mode<synchronous>, transform_indices = @transform_4, window_bounds = array<i64: 128, 512>}, {pipeline_mode = #tpu.pipeline_mode<synchronous>, transform_indices = @transform_5, window_bounds = array<i64: 128, 512>}, {pipeline_mode = #tpu.pipeline_mode<synchronous>, transform_indices = @transform_6, window_bounds = array<i64: 1, 512>}, {pipeline_mode = #tpu.pipeline_mode<synchronous>, transform_indices = @transform_7, window_bounds = array<i64: 128, 128>}, {transform_indices = @transform_8, window_bounds = array<i64: 128, 128>}, {transform_indices = @transform_9, window_bounds = array<i64: 1, 128>}, {transform_indices = @transform_10, window_bounds = array<i64: 1, 128>}, {pipeline_mode = #tpu.pipeline_mode<synchronous>, transform_indices = @transform_11, window_bounds = array<i64: 1, 1>}, {pipeline_mode = #tpu.pipeline_mode<synchronous>, transform_indices = @transform_12, window_bounds = array<i64: 1, 128>}, {pipeline_mode = #tpu.pipeline_mode<synchronous>, transform_indices = @transform_13, window_bounds = array<i64: 1, 128>}, {pipeline_mode = #tpu.pipeline_mode<synchronous>, transform_indices = @transform_14, window_bounds = array<i64: 1, 128>}]} {
    %c0_i32 = arith.constant 0 : i32
    %0 = arith.cmpi eq, %arg0, %c0_i32 : i32
    %1 = arith.extui %0 : i1 to i32
    %c0_i32_0 = arith.constant 0 : i32
    %2 = arith.cmpi ne, %1, %c0_i32_0 : i32
    scf.if %2 {
      %c0_20 = arith.constant 0 : index
      %c0_21 = arith.constant 0 : index
      %28 = vector.load %arg1[%c0_20, %c0_21] : memref<1x128xf32, #tpu.memory_space<vmem>>, vector<1x128xf32>
      %29 = arith.truncf %28 : vector<1x128xf32> to vector<1x128xbf16>
      %c0_22 = arith.constant 0 : index
      %c0_23 = arith.constant 0 : index
      %30 = vector.load %arg2[%c0_22, %c0_23] : memref<1x128xf32, #tpu.memory_space<vmem>>, vector<1x128xf32>
      %c0_24 = arith.constant 0 : index
      %c0_25 = arith.constant 0 : index
      %31 = vector.load %arg3[%c0_24, %c0_25] : memref<1x128xf32, #tpu.memory_space<vmem>>, vector<1x128xf32>
      %c0_26 = arith.constant 0 : index
      %c0_27 = arith.constant 0 : index
      %32 = vector.load %arg5[%c0_26, %c0_27] : memref<128x512xbf16, #tpu.memory_space<vmem>>, vector<128x512xbf16>
      %cst_28 = arith.constant dense<0.000000e+00> : vector<1x512xf32>
      %33 = tpu.matmul %29, %32, %cst_28 {dimension_numbers = #tpu.dot_dimension_numbers<[1], [0], [0], [1], [0, 0, 1, 1], [], []>} : vector<1x128xbf16>, vector<128x512xbf16>, vector<1x512xf32> -> vector<1x512xf32>
      %34 = arith.truncf %30 : vector<1x128xf32> to vector<1x128xbf16>
      %c0_29 = arith.constant 0 : index
      %c0_30 = arith.constant 0 : index
      %35 = vector.load %arg6[%c0_29, %c0_30] : memref<128x512xbf16, #tpu.memory_space<vmem>>, vector<128x512xbf16>
      %cst_31 = arith.constant dense<0.000000e+00> : vector<1x512xf32>
      %36 = tpu.matmul %34, %35, %cst_31 {dimension_numbers = #tpu.dot_dimension_numbers<[1], [0], [0], [1], [0, 0, 1, 1], [], []>} : vector<1x128xbf16>, vector<128x512xbf16>, vector<1x512xf32> -> vector<1x512xf32>
      %37 = arith.addf %33, %36 : vector<1x512xf32>
      %c0_32 = arith.constant 0 : index
      %c0_33 = arith.constant 0 : index
      %38 = vector.load %arg7[%c0_32, %c0_33] : memref<1x512xf32, #tpu.memory_space<vmem>>, vector<1x512xf32>
      %39 = arith.addf %37, %38 : vector<1x512xf32>
      %40 = vector.extract_strided_slice %39 {offsets = [0, 0], sizes = [1, 128], strides = [1, 1]} : vector<1x512xf32> to vector<1x128xf32>
      %41 = arith.negf %40 : vector<1x128xf32>
      %42 = math.exp %41 : vector<1x128xf32>
      %cst_34 = arith.constant 1.000000e+00 : f32
      %43 = vector.broadcast %cst_34 : f32 to vector<1x128xf32>
      %44 = arith.addf %43, %42 : vector<1x128xf32>
      %45 = arith.divf %43, %44 : vector<1x128xf32>
      %46 = vector.extract_strided_slice %39 {offsets = [0, 128], sizes = [1, 128], strides = [1, 1]} : vector<1x512xf32> to vector<1x128xf32>
      %47 = arith.negf %46 : vector<1x128xf32>
      %48 = math.exp %47 : vector<1x128xf32>
      %cst_35 = arith.constant 1.000000e+00 : f32
      %49 = vector.broadcast %cst_35 : f32 to vector<1x128xf32>
      %50 = arith.addf %49, %48 : vector<1x128xf32>
      %51 = arith.divf %49, %50 : vector<1x128xf32>
      %52 = vector.extract_strided_slice %39 {offsets = [0, 256], sizes = [1, 128], strides = [1, 1]} : vector<1x512xf32> to vector<1x128xf32>
      %53 = math.tanh %52 : vector<1x128xf32>
      %54 = vector.extract_strided_slice %39 {offsets = [0, 384], sizes = [1, 128], strides = [1, 1]} : vector<1x512xf32> to vector<1x128xf32>
      %55 = arith.negf %54 : vector<1x128xf32>
      %56 = math.exp %55 : vector<1x128xf32>
      %cst_36 = arith.constant 1.000000e+00 : f32
      %57 = vector.broadcast %cst_36 : f32 to vector<1x128xf32>
      %58 = arith.addf %57, %56 : vector<1x128xf32>
      %59 = arith.divf %57, %58 : vector<1x128xf32>
      %60 = arith.mulf %51, %31 : vector<1x128xf32>
      %61 = arith.mulf %45, %53 : vector<1x128xf32>
      %62 = arith.addf %60, %61 : vector<1x128xf32>
      %63 = math.tanh %62 : vector<1x128xf32>
      %64 = arith.mulf %59, %63 : vector<1x128xf32>
      %c0_37 = arith.constant 0 : index
      %c0_38 = arith.constant 0 : index
      %65 = vector.load %arg4[%c0_37, %c0_38] : memref<8x128xf32, #tpu.memory_space<vmem>>, vector<8x128xf32>
      %66 = arith.truncf %64 : vector<1x128xf32> to vector<1x128xbf16>
      %c0_39 = arith.constant 0 : index
      %c0_40 = arith.constant 0 : index
      %67 = vector.load %arg8[%c0_39, %c0_40] : memref<128x128xbf16, #tpu.memory_space<vmem>>, vector<128x128xbf16>
      %cst_41 = arith.constant dense<0.000000e+00> : vector<1x128xf32>
      %68 = tpu.matmul %66, %67, %cst_41 {dimension_numbers = #tpu.dot_dimension_numbers<[1], [0], [0], [1], [0, 0, 1, 1], [], []>} : vector<1x128xbf16>, vector<128x128xbf16>, vector<1x128xf32> -> vector<1x128xf32>
      %cst_42 = arith.constant dense<0.000000e+00> : vector<1x8xf32>
      %69 = tpu.matmul %68, %65, %cst_42 {dimension_numbers = #tpu.dot_dimension_numbers<[1], [1], [0], [0], [0, 0, 1, 0], [], []>} : vector<1x128xf32>, vector<8x128xf32>, vector<1x8xf32> -> vector<1x8xf32>
      %cst_43 = arith.constant dense<0xFF800000> : vector<1xf32>
      %70 = vector.multi_reduction <maximumf>, %69, %cst_43 [1] : vector<1x8xf32> to vector<1xf32>
      %71 = vector.shape_cast %70 : vector<1xf32> to vector<1x1xf32>
      %72 = vector.broadcast %71 : vector<1x1xf32> to vector<1x8xf32>
      %73 = arith.subf %69, %72 : vector<1x8xf32>
      %74 = math.exp %73 : vector<1x8xf32>
      %cst_44 = arith.constant dense<0.000000e+00> : vector<1xf32>
      %75 = vector.multi_reduction <add>, %74, %cst_44 [1] : vector<1x8xf32> to vector<1xf32>
      %76 = vector.shape_cast %75 : vector<1xf32> to vector<1x1xf32>
      %77 = vector.broadcast %76 : vector<1x1xf32> to vector<1x8xf32>
      %78 = arith.divf %74, %77 : vector<1x8xf32>
      %cst_45 = arith.constant dense<0.000000e+00> : vector<1x128xf32>
      %79 = tpu.matmul %78, %65, %cst_45 {dimension_numbers = #tpu.dot_dimension_numbers<[1], [0], [0], [1], [0, 0, 1, 1], [], []>} : vector<1x8xf32>, vector<8x128xf32>, vector<1x128xf32> -> vector<1x128xf32>
      %80 = arith.truncf %64 : vector<1x128xf32> to vector<1x128xbf16>
      %c0_46 = arith.constant 0 : index
      %c0_47 = arith.constant 0 : index
      %81 = vector.load %arg16[%c0_46, %c0_47] : memref<1x128xbf16, #tpu.memory_space<vmem>>, vector<1x128xbf16>
      tpu.vector_store %arg16[%c0_46, %c0_47], %80 {strides = array<i32>} : memref<1x128xbf16, #tpu.memory_space<vmem>>, vector<1x128xbf16>,
      %cst_48 = arith.constant 0xFF800000 : f32
      %82 = vector.broadcast %cst_48 : f32 to vector<1x1xf32>
      %c0_49 = arith.constant 0 : index
      %c0_50 = arith.constant 0 : index
      %83 = vector.load %arg17[%c0_49, %c0_50] : memref<1x1xf32, #tpu.memory_space<vmem>>, vector<1x1xf32>
      tpu.vector_store %arg17[%c0_49, %c0_50], %82 {strides = array<i32>} : memref<1x1xf32, #tpu.memory_space<vmem>>, vector<1x1xf32>,
      %cst_51 = arith.constant 0.000000e+00 : f32
      %84 = vector.broadcast %cst_51 : f32 to vector<1x1xf32>
      %c0_52 = arith.constant 0 : index
      %c0_53 = arith.constant 0 : index
      %85 = vector.load %arg18[%c0_52, %c0_53] : memref<1x1xf32, #tpu.memory_space<vmem>>, vector<1x1xf32>
      tpu.vector_store %arg18[%c0_52, %c0_53], %84 {strides = array<i32>} : memref<1x1xf32, #tpu.memory_space<vmem>>, vector<1x1xf32>,
      %c0_54 = arith.constant 0 : index
      %c0_55 = arith.constant 0 : index
      %86 = vector.load %arg14[%c0_54, %c0_55] : memref<1x128xf32, #tpu.memory_space<vmem>>, vector<1x128xf32>
      tpu.vector_store %arg14[%c0_54, %c0_55], %64 {strides = array<i32>} : memref<1x128xf32, #tpu.memory_space<vmem>>, vector<1x128xf32>,
      %c0_56 = arith.constant 0 : index
      %c0_57 = arith.constant 0 : index
      %87 = vector.load %arg15[%c0_56, %c0_57] : memref<1x128xf32, #tpu.memory_space<vmem>>, vector<1x128xf32>
      tpu.vector_store %arg15[%c0_56, %c0_57], %62 {strides = array<i32>} : memref<1x128xf32, #tpu.memory_space<vmem>>, vector<1x128xf32>,
      %c0_58 = arith.constant 0 : index
      %c0_59 = arith.constant 0 : index
      %88 = vector.load %arg13[%c0_58, %c0_59] : memref<1x128xf32, #tpu.memory_space<vmem>>, vector<1x128xf32>
      tpu.vector_store %arg13[%c0_58, %c0_59], %79 {strides = array<i32>} : memref<1x128xf32, #tpu.memory_space<vmem>>, vector<1x128xf32>,
    } else {
    }
    %c0 = arith.constant 0 : index
    %c0_1 = arith.constant 0 : index
    %3 = vector.load %arg16[%c0, %c0_1] : memref<1x128xbf16, #tpu.memory_space<vmem>>, vector<1x128xbf16>
    %c0_2 = arith.constant 0 : index
    %c0_3 = arith.constant 0 : index
    %4 = vector.load %arg9[%c0_2, %c0_3] : memref<128x128xbf16, #tpu.memory_space<vmem>>, vector<128x128xbf16>
    %cst = arith.constant dense<0.000000e+00> : vector<1x128xf32>
    %5 = tpu.matmul %3, %4, %cst {dimension_numbers = #tpu.dot_dimension_numbers<[1], [0], [0], [1], [0, 0, 1, 1], [], []>} : vector<1x128xbf16>, vector<128x128xbf16>, vector<1x128xf32> -> vector<1x128xf32>
    %c0_4 = arith.constant 0 : index
    %c0_5 = arith.constant 0 : index
    %6 = vector.load %arg10[%c0_4, %c0_5] : memref<1x128xf32, #tpu.memory_space<vmem>>, vector<1x128xf32>
    %7 = arith.addf %5, %6 : vector<1x128xf32>
    %c0_6 = arith.constant 0 : index
    %c0_7 = arith.constant 0 : index
    %8 = vector.load %arg11[%c0_6, %c0_7] : memref<1x128xf32, #tpu.memory_space<vmem>>, vector<1x128xf32>
    tpu.vector_store %arg11[%c0_6, %c0_7], %7 {strides = array<i32>} : memref<1x128xf32, #tpu.memory_space<vmem>>, vector<1x128xf32>,
    %cst_8 = arith.constant dense<0xFF800000> : vector<1xf32>
    %9 = vector.multi_reduction <maximumf>, %7, %cst_8 [1] : vector<1x128xf32> to vector<1xf32>
    %10 = vector.shape_cast %9 : vector<1xf32> to vector<1x1xf32>
    %c0_9 = arith.constant 0 : index
    %c0_10 = arith.constant 0 : index
    %11 = vector.load %arg17[%c0_9, %c0_10] : memref<1x1xf32, #tpu.memory_space<vmem>>, vector<1x1xf32>
    %12 = arith.maximumf %11, %10 : vector<1x1xf32>
    %c0_11 = arith.constant 0 : index
    %c0_12 = arith.constant 0 : index
    %13 = vector.load %arg18[%c0_11, %c0_12] : memref<1x1xf32, #tpu.memory_space<vmem>>, vector<1x1xf32>
    %14 = arith.subf %11, %12 : vector<1x1xf32>
    %15 = math.exp %14 : vector<1x1xf32>
    %16 = arith.mulf %13, %15 : vector<1x1xf32>
    %17 = vector.broadcast %12 : vector<1x1xf32> to vector<1x128xf32>
    %18 = arith.subf %7, %17 : vector<1x128xf32>
    %19 = math.exp %18 : vector<1x128xf32>
    %cst_13 = arith.constant dense<0.000000e+00> : vector<1xf32>
    %20 = vector.multi_reduction <add>, %19, %cst_13 [1] : vector<1x128xf32> to vector<1xf32>
    %21 = vector.shape_cast %20 : vector<1xf32> to vector<1x1xf32>
    %22 = arith.addf %16, %21 : vector<1x1xf32>
    %c0_14 = arith.constant 0 : index
    %c0_15 = arith.constant 0 : index
    %23 = vector.load %arg18[%c0_14, %c0_15] : memref<1x1xf32, #tpu.memory_space<vmem>>, vector<1x1xf32>
    tpu.vector_store %arg18[%c0_14, %c0_15], %22 {strides = array<i32>} : memref<1x1xf32, #tpu.memory_space<vmem>>, vector<1x1xf32>,
    %c0_16 = arith.constant 0 : index
    %c0_17 = arith.constant 0 : index
    %24 = vector.load %arg17[%c0_16, %c0_17] : memref<1x1xf32, #tpu.memory_space<vmem>>, vector<1x1xf32>
    tpu.vector_store %arg17[%c0_16, %c0_17], %12 {strides = array<i32>} : memref<1x1xf32, #tpu.memory_space<vmem>>, vector<1x1xf32>,
    %c0_i32_18 = arith.constant 0 : i32
    %25 = arith.cmpi eq, %arg0, %c0_i32_18 : i32
    %26 = arith.extui %25 : i1 to i32
    %c0_i32_19 = arith.constant 0 : i32
    %27 = arith.cmpi ne, %26, %c0_i32_19 : i32
    scf.if %27 {
      %c0_20 = arith.constant 0 : index
      %c0_21 = arith.constant 0 : index
      %28 = vector.load %arg17[%c0_20, %c0_21] : memref<1x1xf32, #tpu.memory_space<vmem>>, vector<1x1xf32>
      %c0_22 = arith.constant 0 : index
      %c0_23 = arith.constant 0 : index
      %29 = vector.load %arg18[%c0_22, %c0_23] : memref<1x1xf32, #tpu.memory_space<vmem>>, vector<1x1xf32>
      %30 = math.log %29 : vector<1x1xf32>
      %31 = arith.addf %28, %30 : vector<1x1xf32>
      %c0_24 = arith.constant 0 : index
      %c0_25 = arith.constant 0 : index
      %32 = vector.load %arg12[%c0_24, %c0_25] : memref<1x1xf32, #tpu.memory_space<vmem>>, vector<1x1xf32>
      tpu.vector_store %arg12[%c0_24, %c0_25], %31 {strides = array<i32>} : memref<1x1xf32, #tpu.memory_space<vmem>>, vector<1x1xf32>,
    } else {
    }
    return
  }
  func.func @transform_0(%arg0: i32) -> (i32, i32) {
    %c0_i32 = arith.constant 0 : i32
    %c0_i32_0 = arith.constant 0 : i32
    %c0_i32_1 = arith.constant 0 : i32
    return %c0_i32, %c0_i32_0 : i32, i32
  }
  func.func @transform_1(%arg0: i32) -> (i32, i32) {
    %c0_i32 = arith.constant 0 : i32
    %c0_i32_0 = arith.constant 0 : i32
    %c0_i32_1 = arith.constant 0 : i32
    return %c0_i32, %c0_i32_0 : i32, i32
  }
  func.func @transform_2(%arg0: i32) -> (i32, i32) {
    %c0_i32 = arith.constant 0 : i32
    %c0_i32_0 = arith.constant 0 : i32
    %c0_i32_1 = arith.constant 0 : i32
    return %c0_i32, %c0_i32_0 : i32, i32
  }
  func.func @transform_3(%arg0: i32) -> (i32, i32) {
    %c0_i32 = arith.constant 0 : i32
    %c0_i32_0 = arith.constant 0 : i32
    %c0_i32_1 = arith.constant 0 : i32
    return %c0_i32, %c0_i32_0 : i32, i32
  }
  func.func @transform_4(%arg0: i32) -> (i32, i32) {
    %c0_i32 = arith.constant 0 : i32
    %c0_i32_0 = arith.constant 0 : i32
    %c0_i32_1 = arith.constant 0 : i32
    return %c0_i32, %c0_i32_0 : i32, i32
  }
  func.func @transform_5(%arg0: i32) -> (i32, i32) {
    %c0_i32 = arith.constant 0 : i32
    %c0_i32_0 = arith.constant 0 : i32
    %c0_i32_1 = arith.constant 0 : i32
    return %c0_i32, %c0_i32_0 : i32, i32
  }
  func.func @transform_6(%arg0: i32) -> (i32, i32) {
    %c0_i32 = arith.constant 0 : i32
    %c0_i32_0 = arith.constant 0 : i32
    %c0_i32_1 = arith.constant 0 : i32
    return %c0_i32, %c0_i32_0 : i32, i32
  }
  func.func @transform_7(%arg0: i32) -> (i32, i32) {
    %c0_i32 = arith.constant 0 : i32
    %c0_i32_0 = arith.constant 0 : i32
    %c0_i32_1 = arith.constant 0 : i32
    return %c0_i32, %c0_i32_0 : i32, i32
  }
  func.func @transform_8(%arg0: i32) -> (i32, i32) {
    %c0_i32 = arith.constant 0 : i32
    %c0_i32_0 = arith.constant 0 : i32
    return %c0_i32, %arg0 : i32, i32
  }
  func.func @transform_9(%arg0: i32) -> (i32, i32) {
    %c0_i32 = arith.constant 0 : i32
    %c0_i32_0 = arith.constant 0 : i32
    return %c0_i32, %arg0 : i32, i32
  }
  func.func @transform_10(%arg0: i32) -> (i32, i32) {
    %c0_i32 = arith.constant 0 : i32
    %c0_i32_0 = arith.constant 0 : i32
    return %c0_i32, %arg0 : i32, i32
  }
  func.func @transform_11(%arg0: i32) -> (i32, i32) {
    %c0_i32 = arith.constant 0 : i32
    %c0_i32_0 = arith.constant 0 : i32
    %c0_i32_1 = arith.constant 0 : i32
    return %c0_i32, %c0_i32_0 : i32, i32
  }
  func.func @transform_12(%arg0: i32) -> (i32, i32) {
    %c0_i32 = arith.constant 0 : i32
    %c0_i32_0 = arith.constant 0 : i32
    %c0_i32_1 = arith.constant 0 : i32
    return %c0_i32, %c0_i32_0 : i32, i32
  }
  func.func @transform_13(%arg0: i32) -> (i32, i32) {
    %c0_i32 = arith.constant 0 : i32
    %c0_i32_0 = arith.constant 0 : i32
    %c0_i32_1 = arith.constant 0 : i32
    return %c0_i32, %c0_i32_0 : i32, i32
  }
  func.func @transform_14(%arg0: i32) -> (i32, i32) {
    %c0_i32 = arith.constant 0 : i32
    %c0_i32_0 = arith.constant 0 : i32
    %c0_i32_1 = arith.constant 0 : i32
    return %c0_i32, %c0_i32_0 : i32, i32
  }
}

</mosaic_0001>

<bundles_post_ra>
// kernel: tpu_custom_call.1
= control target key start
LH: loop header
LB: loop body
LE: loop exit
PB: predicated region body
PF: predicated region fallthrough
CT: control target
= control target key end

     0   :  { %20 = vsyncpa [#allocation6], 0  ;;  %s1986_s0 = inlined_call_operand.hbm [shape: f32[1,128], index: 0, kind: input, shape index: {}]   ;;  %s1987_s1 = inlined_call_operand.hbm [shape: f32[1,128], index: 1, kind: input, shape index: {}]   ;;  %s1988_s2 = inlined_call_operand.vmem [shape: f32[1,128], index: 2, kind: input, shape index: {}]   ;;  %s1989_s3 = inlined_call_operand.hbm [shape: f32[8,128], index: 3, kind: input, shape index: {}]   ;;  %s1990_s4 = inlined_call_operand.hbm [shape: bf16[128,512], index: 4, kind: input, shape index: {}]   ;;  %s1991_s5 = inlined_call_operand.hbm [shape: bf16[128,512], index: 5, kind: input, shape index: {}]   ;;  %s1992_s6 = inlined_call_operand.vmem [shape: f32[1,512], index: 6, kind: input, shape index: {}]   ;;  %s1993_s7 = inlined_call_operand.hbm [shape: bf16[128,128], index: 7, kind: input, shape index: {}]   ;;  %s1994_s8 = inlined_call_operand.hbm [shape: bf16[128,128], index: 8, kind: input, shape index: {}]   ;;  %s1995_s9 = inlined_call_operand.vmem [shape: f32[1,128], index: 9, kind: input, shape index: {}]   ;;  %s1996_s10 = inlined_call_operand.hbm [shape: f32[1,128], index: 10, kind: output, shape index: {0}]   ;;  %s1997_s11 = inlined_call_operand.hbm [shape: f32[1,1], index: 11, kind: output, shape index: {1}]   ;;  %s1998_s12 = inlined_call_operand.hbm [shape: f32[1,128], index: 12, kind: output, shape index: {2}]   ;;  %s1999_s13 = inlined_call_operand.hbm [shape: f32[1,128], index: 13, kind: output, shape index: {3}]   ;;  %s2000_s14 = inlined_call_operand.hbm [shape: f32[1,128], index: 14, kind: output, shape index: {4}]  }
   0x1   :  { %21 = vsyncpa [#allocation9], 0 }
   0x2   :  { %22 = vsyncpa [#allocation12], 0 }
   0x3   :  { %23 = vsyncpa [#allocation15], 0 }
   0x4   :  { %24 = vsyncpa [#allocation7], 0 }
   0x5   :  { %25 = vsyncpa [#allocation19], 0  ;;  %s43_s15 = sshll.u32 %s1987_s1, 4  ;;  %s44_s15 = int_to_ptr.hbm [resolvable:$true] %s43_s15 }
   0x6   :  { %26 = vsyncpa [#allocation22], 0  ;;  %s1831_s16 = smov [#allocation8]   ;;  %s66_s20 = sshll.u32 %s1990_s4, 4  ;;  %s67_s20 = int_to_ptr.hbm [resolvable:$true] %s66_s20 }
   0x7   :  { %s45_s17 = sshll.u32 %s1831_s16, 4  ;;  %s1832_s21 = smov [#allocation11]   ;;  %s46_s17 = int_to_ptr.vmem [resolvable:$true] %s45_s17 }
   0x8   :  { %48 = dma.hbm_to_vmem [thread:$0]  %s44_s15, 16, %s46_s17, [#allocation9]  }
   0x9   :  { %s68_s22 = sshll.u32 %s1832_s21, 4  ;;  %s1833_s23 = smov 256   ;;  %s69_s22 = int_to_ptr.vmem [resolvable:$true] %s68_s22 }
   0xa   :  { %s1834_s24 = smov 16   ;;  %s94_s26 = sshll.u32 %s1993_s7, 4  ;;  %s95_s26 = int_to_ptr.hbm [resolvable:$true] %s94_s26 }
   0xb   :  { %74 = dma.hbm_to_vmem [thread:$0]  %s67_s20, 4096, %s69_s22, [#allocation12], %s1833_s23, %s1833_s23, %s1834_s24  }
   0xc   :  { %s1835_s27 = smov [#allocation14]   ;;  %s32_s30 = sshll.u32 %s1986_s0, 4  ;;  %s33_s30 = int_to_ptr.hbm [resolvable:$true] %s32_s30 }
   0xd   :  { %s96_s28 = sshll.u32 %s1835_s27, 4  ;;  %s1836_s15 = smov 64   ;;  %s97_s28 = int_to_ptr.vmem [resolvable:$true] %s96_s28 }
   0xe   :  { %s1837_s16 = smov 4   ;;  %s1838_s17 = smov [#allocation5]  }
   0xf   :  { %102 = dma.hbm_to_vmem [thread:$0]  %s95_s26, 1024, %s97_s28, [#allocation15], %s1836_s15, %s1836_s15, %s1837_s16  }
  0x10   :  { %s34_s18 = sshll.u32 %s1838_s17, 4  ;;  %s56_s21 = sshll.u32 %s1989_s3, 4  ;;  %s35_s18 = int_to_ptr.vmem [resolvable:$true] %s34_s18  ;;  %s57_s21 = int_to_ptr.hbm [resolvable:$true] %s56_s21 }
  0x11   :  { %37 = dma.hbm_to_vmem [thread:$0]  %s33_s30, 16, %s35_s18, [#allocation6]  }
  0x12   :  { %s79_s1 = sshll.u32 %s1991_s5, 4  ;;  %s1839_s25 = smov [#allocation10]   ;;  %s80_s1 = int_to_ptr.hbm [resolvable:$true] %s79_s1 }
  0x13   :  { %s58_s27 = sshll.u32 %s1839_s25, 4  ;;  %s1840_s0 = smov [#allocation13]   ;;  %s59_s27 = int_to_ptr.vmem [resolvable:$true] %s58_s27 }
  0x14   :  { %61 = dma.hbm_to_vmem [thread:$0]  %s57_s21, 128, %s59_s27, [#allocation9]  }
  0x15   :  { %s81_s26 = sshll.u32 %s1840_s0, 4  ;;  %s107_s29 = sshll.u32 %s1994_s8, 4  ;;  %s82_s26 = int_to_ptr.vmem [resolvable:$true] %s81_s26  ;;  %s108_s29 = int_to_ptr.hbm [resolvable:$true] %s107_s29 }
  0x16   :  { %87 = dma.hbm_to_vmem [thread:$0]  %s80_s1, 4096, %s82_s26, [#allocation12], %s1833_s23, %s1833_s23, %s1834_s24  }
  0x17   :  { %s1841_s3 = smov [#allocation16]  }
  0x18   :  { %s109_s30 = sshll.u32 %s1841_s3, 4  ;;  %s110_s30 = int_to_ptr.vmem [resolvable:$true] %s109_s30 }
  0x19   :  { %115 = dma.hbm_to_vmem [thread:$0]  %s108_s29, 1024, %s110_s30, [#allocation15], %s1836_s15, %s1836_s15, %s1837_s16  }
  0x1a   :  { %1817 = dma.done.wait [#allocation6], 16  }
  0x1b   :  { %1818 = vsyncadd [#allocation6], 4294967280 }
  0x1c   :  { %1819 = dma.done.wait [#allocation9], 144  }
  0x1d   :  { %1820 = vsyncadd [#allocation9], 4294967152 }
  0x1e   :  { %1821 = dma.done.wait [#allocation12], 8192  }
  0x1f   :  { %1822 = vsyncadd [#allocation12], 4294959104 }
  0x20   :  { %1823 = dma.done.wait [#allocation15], 2048  }
  0x21   :  { %1824 = vsyncadd [#allocation15], 4294965248  ;;  %v1192_v0 = vld [vmem:[#allocation13 + $0xe0] sm:$0xf]  ;;  %v1464_v1 = vld [vmem:[#allocation13 + $0xec] sm:$0xf0] }
  0x22   :  { %v1462_v2 = vld [vmem:[#allocation13 + $0xe4] sm:$0xf]  ;;  %v1193_v3 = vor.u32 %v1464_v1, %v1192_v0  ;;  %v1194_v4 = vld [vmem:[#allocation13 + $0xf0] sm:$0xf0]  ;;  %v1200_v5 = vld [vmem:[#allocation13 + $0xe8] sm:$0xf] }
  0x23   :  { %v1465_v6 = vld [vmem:[#allocation13 + $0xf4] sm:$0xf0]  ;;  %v1197_v7 = vor.u32 %v1462_v2, %v1194_v4  ;;  %v1463_v9 = vld [vmem:[#allocation13 + $0xec] sm:$0xf]  ;;  %v1202_v10 = vld [vmem:[#allocation13 + $0xf8] sm:$0xf0] }
  0x24   :  { %v1201_v8 = vor.u32 %v1465_v6, %v1200_v5  ;;  %v1176_v11 = vld [vmem:[#allocation13 + $0xc0] sm:$0xf]  ;;  %379 = vmatpush.bf16.msra.mxu0 %v1193_v3  ;;  %v1205_v12 = vor.u32 %v1463_v9, %v1202_v10  ;;  %v1460_v13 = vld [vmem:[#allocation13 + $0xcc] sm:$0xf0]  ;;  %v1458_v14 = vld [vmem:[#allocation13 + $0xc4] sm:$0xf] }
  0x25   :  { %v1178_v15 = vld [vmem:[#allocation13 + $0xd0] sm:$0xf0]  ;;  %392 = vmatpush.bf16.msra.mxu1 %v1197_v7  ;;  %v1177_v16 = vor.u32 %v1460_v13, %v1176_v11  ;;  %v1184_v18 = vld [vmem:[#allocation13 + $0xc8] sm:$0xf]  ;;  %v1461_v19 = vld [vmem:[#allocation13 + $0xd4] sm:$0xf0] }
  0x26   :  { %405 = vmatpush.bf16.msra.mxu2 %v1201_v8  ;;  %v1181_v17 = vor.u32 %v1458_v14, %v1178_v15  ;;  %v1459_v20 = vld [vmem:[#allocation13 + $0xcc] sm:$0xf]  ;;  %418 = vmatpush.bf16.msra.mxu3 %v1205_v12  ;;  %v1185_v21 = vor.u32 %v1461_v19, %v1184_v18  ;;  %v1186_v22 = vld [vmem:[#allocation13 + $0xd8] sm:$0xf0]  ;;  %v1160_v23 = vld [vmem:[#allocation13 + $0xa0] sm:$0xf] }
  0x27   :  { %v1456_v24 = vld [vmem:[#allocation13 + $0xac] sm:$0xf0]  ;;  %v1189_v25 = vor.u32 %v1459_v20, %v1186_v22  ;;  %v1454_v26 = vld [vmem:[#allocation13 + $0xa4] sm:$0xf]  ;;  %v1162_v27 = vld [vmem:[#allocation13 + $0xb0] sm:$0xf0] }
  0x28   :  { %v1168_v28 = vld [vmem:[#allocation13 + $0xa8] sm:$0xf]  ;;  %380 = vmatpush.bf16.msra.mxu0 %v1177_v16  ;;  %v1161_v29 = vor.u32 %v1456_v24, %v1160_v23  ;;  %v1457_v30 = vld [vmem:[#allocation13 + $0xb4] sm:$0xf0]  ;;  %v1455_v31 = vld [vmem:[#allocation13 + $0xac] sm:$0xf]  ;;  %v1165_v33 = vor.u32 %v1454_v26, %v1162_v27 }
  0x29   :  { %v1170_v32 = vld [vmem:[#allocation13 + $0xb8] sm:$0xf0]  ;;  %393 = vmatpush.bf16.msra.mxu1 %v1181_v17  ;;  %v1169_v34 = vor.u32 %v1457_v30, %v1168_v28  ;;  %v1144_v35 = vld [vmem:[#allocation13 + $0x80] sm:$0xf]  ;;  %v1452_v36 = vld [vmem:[#allocation13 + $0x8c] sm:$0xf0] }
  0x2a   :  { %406 = vmatpush.bf16.msra.mxu2 %v1185_v21  ;;  %v1450_v37 = vld [vmem:[#allocation13 + $0x84] sm:$0xf]  ;;  %419 = vmatpush.bf16.msra.mxu3 %v1189_v25  ;;  %v1173_v38 = vor.u32 %v1455_v31, %v1170_v32  ;;  %v1146_v39 = vld [vmem:[#allocation13 + $0x90] sm:$0xf0]  ;;  %v1152_v40 = vld [vmem:[#allocation13 + $0x88] sm:$0xf]  ;;  %v1145_v44 = vor.u32 %v1452_v36, %v1144_v35 }
  0x2b   :  { %v1453_v41 = vld [vmem:[#allocation13 + $0x94] sm:$0xf0]  ;;  %v1451_v42 = vld [vmem:[#allocation13 + $0x8c] sm:$0xf]  ;;  %v1154_v43 = vld [vmem:[#allocation13 + $0x98] sm:$0xf0]  ;;  %v1149_v45 = vor.u32 %v1450_v37, %v1146_v39 }
  0x2c   :  { %381 = vmatpush.bf16.msra.mxu0 %v1161_v29  ;;  %v1153_v46 = vor.u32 %v1453_v41, %v1152_v40  ;;  %v1128_v47 = vld [vmem:[#allocation13 + $0x60] sm:$0xf]  ;;  %v1448_v48 = vld [vmem:[#allocation13 + $0x6c] sm:$0xf0]  ;;  %v1446_v49 = vld [vmem:[#allocation13 + $0x64] sm:$0xf]  ;;  %v1157_v50 = vor.u32 %v1451_v42, %v1154_v43 }
  0x2d   :  { %394 = vmatpush.bf16.msra.mxu1 %v1165_v33  ;;  %v1130_v51 = vld [vmem:[#allocation13 + $0x70] sm:$0xf0]  ;;  %v1136_v52 = vld [vmem:[#allocation13 + $0x68] sm:$0xf]  ;;  %v1449_v53 = vld [vmem:[#allocation13 + $0x74] sm:$0xf0]  ;;  %v1129_v56 = vor.u32 %v1448_v48, %v1128_v47 }
  0x2e   :  { %407 = vmatpush.bf16.msra.mxu2 %v1169_v34  ;;  %420 = vmatpush.bf16.msra.mxu3 %v1173_v38  ;;  %v1447_v54 = vld [vmem:[#allocation13 + $0x6c] sm:$0xf]  ;;  %v1138_v55 = vld [vmem:[#allocation13 + $0x78] sm:$0xf0]  ;;  %v1133_v57 = vor.u32 %v1446_v49, %v1130_v51  ;;  %v1137_v58 = vor.u32 %v1449_v53, %v1136_v52  ;;  %v1112_v59 = vld [vmem:[#allocation13 + $0x40] sm:$0xf] }
  0x2f   :  { %v1444_v60 = vld [vmem:[#allocation13 + $0x4c] sm:$0xf0]  ;;  %v1442_v61 = vld [vmem:[#allocation13 + $0x44] sm:$0xf]  ;;  %v1141_v62 = vor.u32 %v1447_v54, %v1138_v55  ;;  %v1114_v63 = vld [vmem:[#allocation13 + $0x50] sm:$0xf0] }
  0x30   :  { %382 = vmatpush.bf16.msra.mxu0 %v1145_v44  ;;  %v1120_v0 = vld [vmem:[#allocation13 + $0x48] sm:$0xf]  ;;  %v1445_v1 = vld [vmem:[#allocation13 + $0x54] sm:$0xf0]  ;;  %v1443_v2 = vld [vmem:[#allocation13 + $0x4c] sm:$0xf]  ;;  %v1113_v4 = vor.u32 %v1444_v60, %v1112_v59  ;;  %v1117_v5 = vor.u32 %v1442_v61, %v1114_v63 }
  0x31   :  { %395 = vmatpush.bf16.msra.mxu1 %v1149_v45  ;;  %v1122_v3 = vld [vmem:[#allocation13 + $0x58] sm:$0xf0]  ;;  %v1121_v6 = vor.u32 %v1445_v1, %v1120_v0  ;;  %v1096_v7 = vld [vmem:[#allocation13 + $0x20] sm:$0xf]  ;;  %v1440_v8 = vld [vmem:[#allocation13 + $0x2c] sm:$0xf0] }
  0x32   :  { %408 = vmatpush.bf16.msra.mxu2 %v1153_v46  ;;  %421 = vmatpush.bf16.msra.mxu3 %v1157_v50  ;;  %v1438_v9 = vld [vmem:[#allocation13 + $0x24] sm:$0xf]  ;;  %v1125_v10 = vor.u32 %v1443_v2, %v1122_v3  ;;  %v1098_v11 = vld [vmem:[#allocation13 + $0x30] sm:$0xf0]  ;;  %v1104_v12 = vld [vmem:[#allocation13 + $0x28] sm:$0xf]  ;;  %v1097_v16 = vor.u32 %v1440_v8, %v1096_v7 }
  0x33   :  { %v1441_v13 = vld [vmem:[#allocation13 + $0x34] sm:$0xf0]  ;;  %v1439_v14 = vld [vmem:[#allocation13 + $0x2c] sm:$0xf]  ;;  %v1106_v15 = vld [vmem:[#allocation13 + $0x38] sm:$0xf0]  ;;  %v1101_v19 = vor.u32 %v1438_v9, %v1098_v11 }
  0x34   :  { %383 = vmatpush.bf16.msra.mxu0 %v1129_v56  ;;  %v1080_v17 = vld [vmem:[#allocation13] sm:$0xf]  ;;  %v1436_v18 = vld [vmem:[#allocation13 + $0xc] sm:$0xf0]  ;;  %v1105_v20 = vor.u32 %v1441_v13, %v1104_v12  ;;  %v1434_v21 = vld [vmem:[#allocation13 + $0x4] sm:$0xf]  ;;  %v1109_v24 = vor.u32 %v1439_v14, %v1106_v15 }
  0x35   :  { %396 = vmatpush.bf16.msra.mxu1 %v1133_v57  ;;  %v1082_v22 = vld [vmem:[#allocation13 + $0x10] sm:$0xf0]  ;;  %v1088_v23 = vld [vmem:[#allocation13 + $0x8] sm:$0xf]  ;;  %v1437_v25 = vld [vmem:[#allocation13 + $0x14] sm:$0xf0]  ;;  %v1081_v31 = vor.u32 %v1436_v18, %v1080_v17 }
  0x36   :  { %409 = vmatpush.bf16.msra.mxu2 %v1137_v58  ;;  %422 = vmatpush.bf16.msra.mxu3 %v1141_v62  ;;  %v1435_v26 = vld [vmem:[#allocation13 + $0xc] sm:$0xf]  ;;  %v1090_v27 = vld [vmem:[#allocation13 + $0x18] sm:$0xf0]  ;;  %v1320_v28 = vld [vmem:[#allocation11 + $0xe0] sm:$0xf]  ;;  %v1085_v35 = vor.u32 %v1434_v21, %v1082_v22  ;;  %v1089_v36 = vor.u32 %v1437_v25, %v1088_v23 }
  0x37   :  { %v1432_v29 = vld [vmem:[#allocation11 + $0xec] sm:$0xf0]  ;;  %v1430_v30 = vld [vmem:[#allocation11 + $0xe4] sm:$0xf]  ;;  %v1322_v32 = vld [vmem:[#allocation11 + $0xf0] sm:$0xf0]  ;;  %v1093_v40 = vor.u32 %v1435_v26, %v1090_v27 }
  0x38   :  { %384 = vmatpush.bf16.msra.mxu0 %v1113_v4  ;;  %v1328_v33 = vld [vmem:[#allocation11 + $0xe8] sm:$0xf]  ;;  %v1433_v34 = vld [vmem:[#allocation11 + $0xf4] sm:$0xf0]  ;;  %v1431_v37 = vld [vmem:[#allocation11 + $0xec] sm:$0xf]  ;;  %v1321_v41 = vor.u32 %v1432_v29, %v1320_v28  ;;  %v1325_v42 = vor.u32 %v1430_v30, %v1322_v32 }
  0x39   :  { %397 = vmatpush.bf16.msra.mxu1 %v1117_v5  ;;  %v1330_v38 = vld [vmem:[#allocation11 + $0xf8] sm:$0xf0]  ;;  %v152_v39 = vld [vmem:[#allocation8] sm:$0x1]  ;;  %v1329_v43 = vor.u32 %v1433_v34, %v1328_v33  ;;  %v1304_v44 = vld [vmem:[#allocation11 + $0xc0] sm:$0xf] }
  0x3a   :  { %410 = vmatpush.bf16.msra.mxu2 %v1121_v6  ;;  %423 = vmatpush.bf16.msra.mxu3 %v1125_v10  ;;  %v1428_v45 = vld [vmem:[#allocation11 + $0xcc] sm:$0xf0]  ;;  %v1426_v46 = vld [vmem:[#allocation11 + $0xc4] sm:$0xf]  ;;  %v1333_v47 = vor.u32 %v1431_v37, %v1330_v38  ;;  %v1306_v48 = vld [vmem:[#allocation11 + $0xd0] sm:$0xf0]  ;;  %v186_v51 = vpack.c.bf16 %v152_v39, %v152_v39 }
  0x3b   :  { %v1312_v49 = vld [vmem:[#allocation11 + $0xc8] sm:$0xf]  ;;  %v1429_v50 = vld [vmem:[#allocation11 + $0xd4] sm:$0xf0]  ;;  %v1427_v52 = vld [vmem:[#allocation11 + $0xcc] sm:$0xf]  ;;  %v1305_v54 = vor.u32 %v1428_v45, %v1304_v44  ;;  %v1309_v55 = vor.u32 %v1426_v46, %v1306_v48 }
  0x3c   :  { %385 = vmatpush.bf16.msra.mxu0 %v1097_v16  ;;  %v1314_v53 = vld [vmem:[#allocation11 + $0xd8] sm:$0xf0]  ;;  %v1313_v56 = vor.u32 %v1429_v50, %v1312_v49  ;;  %v1288_v57 = vld [vmem:[#allocation11 + $0xa0] sm:$0xf]  ;;  %v1424_v58 = vld [vmem:[#allocation11 + $0xac] sm:$0xf0] }
  0x3d   :  { %398 = vmatpush.bf16.msra.mxu1 %v1101_v19  ;;  %v1422_v59 = vld [vmem:[#allocation11 + $0xa4] sm:$0xf]  ;;  %v1317_v60 = vor.u32 %v1427_v52, %v1314_v53  ;;  %v1290_v61 = vld [vmem:[#allocation11 + $0xb0] sm:$0xf0]  ;;  %v1296_v62 = vld [vmem:[#allocation11 + $0xa8] sm:$0xf]  ;;  %v1289_v2 = vor.u32 %v1424_v58, %v1288_v57 }
  0x3e   :  { %411 = vmatpush.bf16.msra.mxu2 %v1105_v20  ;;  %424 = vmatpush.bf16.msra.mxu3 %v1109_v24  ;;  %v1425_v63 = vld [vmem:[#allocation11 + $0xb4] sm:$0xf0]  ;;  %v1423_v0 = vld [vmem:[#allocation11 + $0xac] sm:$0xf]  ;;  %v1298_v1 = vld [vmem:[#allocation11 + $0xb8] sm:$0xf0]  ;;  %v1293_v3 = vor.u32 %v1422_v59, %v1290_v61 }
  0x3f   :  { %v1297_v4 = vor.u32 %v1425_v63, %v1296_v62  ;;  %v1272_v5 = vld [vmem:[#allocation11 + $0x80] sm:$0xf]  ;;  %v1420_v6 = vld [vmem:[#allocation11 + $0x8c] sm:$0xf0]  ;;  %v1418_v7 = vld [vmem:[#allocation11 + $0x84] sm:$0xf]  ;;  %v1301_v8 = vor.u32 %v1423_v0, %v1298_v1 }
  0x40   :  { %386 = vmatpush.bf16.msra.mxu0 %v1081_v31  ;;  %v1274_v9 = vld [vmem:[#allocation11 + $0x90] sm:$0xf0]  ;;  %v1280_v10 = vld [vmem:[#allocation11 + $0x88] sm:$0xf]  ;;  %v1421_v11 = vld [vmem:[#allocation11 + $0x94] sm:$0xf0]  ;;  %v1273_v14 = vor.u32 %v1420_v6, %v1272_v5 }
  0x41   :  { %399 = vmatpush.bf16.msra.mxu1 %v1085_v35  ;;  %v1419_v12 = vld [vmem:[#allocation11 + $0x8c] sm:$0xf]  ;;  %v1282_v13 = vld [vmem:[#allocation11 + $0x98] sm:$0xf0]  ;;  %v1277_v15 = vor.u32 %v1418_v7, %v1274_v9  ;;  %v1281_v16 = vor.u32 %v1421_v11, %v1280_v10  ;;  %v1256_v17 = vld [vmem:[#allocation11 + $0x60] sm:$0xf] }
  0x42   :  { %412 = vmatpush.bf16.msra.mxu2 %v1089_v36  ;;  %425 = vmatpush.bf16.msra.mxu3 %v1093_v40  ;;  %v1416_v18 = vld [vmem:[#allocation11 + $0x6c] sm:$0xf0]  ;;  %v1414_v19 = vld [vmem:[#allocation11 + $0x64] sm:$0xf]  ;;  %v1285_v20 = vor.u32 %v1419_v12, %v1282_v13  ;;  %v1258_v21 = vld [vmem:[#allocation11 + $0x70] sm:$0xf0] }
  0x43   :  { %387 = vmatmul.bf16.vlgmr.msra.gmra.mxu0 %v186_v51  ;;  %v1264_v22 = vld [vmem:[#allocation11 + $0x68] sm:$0xf]  ;;  %v1417_v23 = vld [vmem:[#allocation11 + $0x74] sm:$0xf0]  ;;  %v1415_v24 = vld [vmem:[#allocation11 + $0x6c] sm:$0xf]  ;;  %v1257_v26 = vor.u32 %v1416_v18, %v1256_v17  ;;  %v1261_v27 = vor.u32 %v1414_v19, %v1258_v21 }
  0x44   :  { %591 = vmatpush.bf16.msrb.mxu0 %v1321_v41  ;;  %400 = vmatmul.bf16.vlgmr.msra.gmra.mxu1 %v186_v51  ;;  %v1266_v25 = vld [vmem:[#allocation11 + $0x78] sm:$0xf0]  ;;  %v1265_v28 = vor.u32 %v1417_v23, %v1264_v22  ;;  %v1240_v29 = vld [vmem:[#allocation11 + $0x40] sm:$0xf]  ;;  %v1412_v30 = vld [vmem:[#allocation11 + $0x4c] sm:$0xf0] }
  0x45   :  { %604 = vmatpush.bf16.msrb.mxu1 %v1325_v42  ;;  %426 = vmatmul.bf16.vlgmr.msra.gmra.mxu3 %v186_v51  ;;  %v1410_v31 = vld [vmem:[#allocation11 + $0x44] sm:$0xf]  ;;  %v1269_v32 = vor.u32 %v1415_v24, %v1266_v25  ;;  %v1242_v33 = vld [vmem:[#allocation11 + $0x50] sm:$0xf0]  ;;  %v1248_v34 = vld [vmem:[#allocation11 + $0x48] sm:$0xf]  ;;  %v1241_v38 = vor.u32 %v1412_v30, %v1240_v29 }
  0x46   :  { %617 = vmatpush.bf16.msrb.mxu2 %v1329_v43  ;;  %630 = vmatpush.bf16.msrb.mxu3 %v1333_v47  ;;  %v1413_v35 = vld [vmem:[#allocation11 + $0x54] sm:$0xf0]  ;;  %v1411_v36 = vld [vmem:[#allocation11 + $0x4c] sm:$0xf]  ;;  %v1250_v37 = vld [vmem:[#allocation11 + $0x58] sm:$0xf0]  ;;  %v1245_v39 = vor.u32 %v1410_v31, %v1242_v33 }
  0x47   :  { %413 = vmatmul.bf16.vlgmr.msra.gmra.mxu2 %v186_v51  ;;  %v1249_v40 = vor.u32 %v1413_v35, %v1248_v34  ;;  %v1224_v41 = vld [vmem:[#allocation11 + $0x20] sm:$0xf]  ;;  %v1408_v42 = vld [vmem:[#allocation11 + $0x2c] sm:$0xf0]  ;;  %v1406_v43 = vld [vmem:[#allocation11 + $0x24] sm:$0xf]  ;;  %v1253_v44 = vor.u32 %v1411_v36, %v1250_v37 }
  0x48   :  { %592 = vmatpush.bf16.msrb.mxu0 %v1305_v54  ;;  %v1226_v45 = vld [vmem:[#allocation11 + $0x30] sm:$0xf0]  ;;  %v1232_v46 = vld [vmem:[#allocation11 + $0x28] sm:$0xf]  ;;  %v1409_v47 = vld [vmem:[#allocation11 + $0x34] sm:$0xf0]  ;;  %v1225_v50 = vor.u32 %v1408_v42, %v1224_v41 }
  0x49   :  { %605 = vmatpush.bf16.msrb.mxu1 %v1309_v55  ;;  %v1407_v48 = vld [vmem:[#allocation11 + $0x2c] sm:$0xf]  ;;  %v1234_v49 = vld [vmem:[#allocation11 + $0x38] sm:$0xf0]  ;;  %v1229_v51 = vor.u32 %v1406_v43, %v1226_v45  ;;  %v1233_v52 = vor.u32 %v1409_v47, %v1232_v46  ;;  %v1208_v53 = vld [vmem:[#allocation11] sm:$0xf] }
  0x4a   :  { %618 = vmatpush.bf16.msrb.mxu2 %v1313_v56  ;;  %631 = vmatpush.bf16.msrb.mxu3 %v1317_v60  ;;  %v1404_v54 = vld [vmem:[#allocation11 + $0xc] sm:$0xf0]  ;;  %v1402_v55 = vld [vmem:[#allocation11 + $0x4] sm:$0xf]  ;;  %v1237_v56 = vor.u32 %v1407_v48, %v1234_v49  ;;  %v1210_v57 = vld [vmem:[#allocation11 + $0x10] sm:$0xf0] }
  0x4b   :  { %v1216_v58 = vld [vmem:[#allocation11 + $0x8] sm:$0xf]  ;;  %v1405_v59 = vld [vmem:[#allocation11 + $0x14] sm:$0xf0]  ;;  %v1403_v60 = vld [vmem:[#allocation11 + $0xc] sm:$0xf]  ;;  %v1209_v62 = vor.u32 %v1404_v54, %v1208_v53  ;;  %v1213_v0 = vor.u32 %v1402_v55, %v1210_v57 }
  0x4c   :  { %593 = vmatpush.bf16.msrb.mxu0 %v1289_v2  ;;  %v1218_v61 = vld [vmem:[#allocation11 + $0x18] sm:$0xf0]  ;;  %v150_v63 = vld [vmem:[#allocation5] sm:$0x1]  ;;  %v1217_v1 = vor.u32 %v1405_v59, %v1216_v58  ;;  %v1470_v17 = vld [vmem:[#allocation14 + $0x20] sm:$0xff]  ;;  %vm868_vm12 = vcmask 1040384  }
  0x4d   :  { %606 = vmatpush.bf16.msrb.mxu1 %v1293_v3  ;;  %v1221_v2 = vor.u32 %v1403_v60, %v1218_v61  ;;  %v151_v3 = vpack.c.bf16 %v150_v63, %v150_v63  ;;  %v1473_v10 = vld [vmem:[#allocation14 + $0x38] sm:$0xff]  ;;  %v1472_v13 = vld [vmem:[#allocation14 + $0x30] sm:$0xff]  ;;  %v1467_v35 = vld [vmem:[#allocation14 + $0x8] sm:$0xff]  ;;  %vm869_vm13 = vsmask.f32 256  ;;  %vm874_vm15 = vcmask 0  }
  0x4e   :  { %619 = vmatpush.bf16.msrb.mxu2 %v1297_v4  ;;  %632 = vmatpush.bf16.msrb.mxu3 %v1301_v8  ;;  %v1480_v18 = vld [vmem:[#allocation16 + $0x30] sm:$0xff]  ;;  %v1469_v24 = vld [vmem:[#allocation14 + $0x18] sm:$0xff]  ;;  %v1466_v42 = vld [vmem:[#allocation14] sm:$0xff]  ;;  %s1014_s18 = sshll.u32 %s1997_s11, 4  ;;  %s1846_s19 = smov [#allocation21]   ;;  %s1015_s18 = int_to_ptr.hbm [resolvable:$true] %s1014_s18 }
  0x4f   :  { %v1468_v30 = vld [vmem:[#allocation14 + $0x10] sm:$0xff]  ;;  %v1475_v53 = vld [vmem:[#allocation16 + $0x8] sm:$0xff]  ;;  %v1474_v54 = vld [vmem:[#allocation16] sm:$0xff]  ;;  %s1034_s20 = sshll.u32 %s1846_s19, 4  ;;  %s1036_s22 = sshll.u32 %s1999_s13, 4  ;;  %s1035_s20 = int_to_ptr.vmem [resolvable:$true] %s1034_s20  ;;  %s1037_s22 = int_to_ptr.hbm [resolvable:$true] %s1036_s22 }
  0x50   :  { %594 = vmatpush.bf16.msrb.mxu0 %v1273_v14  ;;  %v1471_v14 = vld [vmem:[#allocation14 + $0x28] sm:$0xff]  ;;  %v1476_v43 = vld [vmem:[#allocation16 + $0x10] sm:$0xff]  ;;  %vm870_vm14 = vmand %vm868_vm12, %vm869_vm13  ;;  %s1003_s27 = sshll.u32 %s1996_s10, 4  ;;  %s1847_s11 = smov [#allocation17]   ;;  %s1004_s27 = int_to_ptr.hbm [resolvable:$true] %s1003_s27 }
  0x51   :  { %607 = vmatpush.bf16.msrb.mxu1 %v1277_v15  ;;  %v1481_v15 = vld [vmem:[#allocation16 + $0x38] sm:$0xff]  ;;  %s1001_s0 = sshll.u32 %s1847_s11, 4  ;;  %s1047_s28 = sshll.u32 %s2000_s14, 4  ;;  %s1002_s0 = int_to_ptr.vmem [resolvable:$true] %s1001_s0  ;;  %s1048_s28 = int_to_ptr.hbm [resolvable:$true] %s1047_s28 }
  0x52   :  { %620 = vmatpush.bf16.msrb.mxu2 %v1281_v16  ;;  %633 = vmatpush.bf16.msrb.mxu3 %v1285_v20  ;;  %v643_v16 = vld [vmem:[%s1992_s6] sm:$0xf]  ;;  %s1848_s4 = smov [#allocation23]   ;;  %s1849_s3 = smov [#allocation20]  }
  0x53   :  { %v645_v19 = vperm.slane %v643_v16, 0  ;;  %v646_v21 = vperm.slane %v643_v16, 1  ;;  %v648_v34 = vperm.slane %v643_v16, 3  ;;  %s1045_s29 = sshll.u32 %s1848_s4, 4  ;;  %s1023_s10 = sshll.u32 %s1849_s3, 4  ;;  %s1046_s29 = int_to_ptr.vmem [resolvable:$true] %s1045_s29  ;;  %s1024_s10 = int_to_ptr.vmem [resolvable:$true] %s1023_s10 }
  0x54   :  { %595 = vmatpush.bf16.msrb.mxu0 %v1257_v26  ;;  %v1479_v26 = vld [vmem:[#allocation16 + $0x28] sm:$0xff]  ;;  %s1025_s8 = sshll.u32 %s1998_s12, 4  ;;  %s1026_s8 = int_to_ptr.hbm [resolvable:$true] %s1025_s8 }
  0x55   :  { %608 = vmatpush.bf16.msrb.mxu1 %v1261_v27 }
  0x56   :  { %621 = vmatpush.bf16.msrb.mxu2 %v1265_v28  ;;  %634 = vmatpush.bf16.msrb.mxu3 %v1269_v32  ;;  %v1478_v32 = vld [vmem:[#allocation16 + $0x20] sm:$0xff] }
  0x58   :  { %596 = vmatpush.bf16.msrb.mxu0 %v1241_v38  ;;  %v1477_v38 = vld [vmem:[#allocation16 + $0x18] sm:$0xff] }
  0x59   :  { %609 = vmatpush.bf16.msrb.mxu1 %v1245_v39 }
  0x5a   :  { %622 = vmatpush.bf16.msrb.mxu2 %v1249_v40  ;;  %635 = vmatpush.bf16.msrb.mxu3 %v1253_v44 }
  0x5c   :  { %597 = vmatpush.bf16.msrb.mxu0 %v1225_v50 }
  0x5d   :  { %610 = vmatpush.bf16.msrb.mxu1 %v1229_v51 }
  0x5e   :  { %623 = vmatpush.bf16.msrb.mxu2 %v1233_v52  ;;  %636 = vmatpush.bf16.msrb.mxu3 %v1237_v56  ;;  %v647_v52 = vperm.slane %v643_v16, 2 }
  0x60   :  { %598 = vmatpush.bf16.msrb.mxu0 %v1209_v62 }
  0x61   :  { %611 = vmatpush.bf16.msrb.mxu1 %v1213_v0 }
  0x62   :  { %624 = vmatpush.bf16.msrb.mxu2 %v1217_v1  ;;  %637 = vmatpush.bf16.msrb.mxu3 %v1221_v2  ;;  %v720_v1 = vld [vmem:[#allocation10] sm:$0xff] }
  0x63   :  { %599 = vmatmul.bf16.vlgmr.msrb.gmra.mxu0 %v151_v3 }
  0x64   :  { %612 = vmatmul.bf16.vlgmr.msrb.gmra.mxu1 %v151_v3  ;;  %786 = vmatpush.bf16.msra.mxu0 %v1473_v10 }
  0x65   :  { %625 = vmatmul.bf16.vlgmr.msrb.gmra.mxu2 %v151_v3  ;;  %638 = vmatmul.bf16.vlgmr.msrb.gmra.mxu3 %v151_v3 }
  0x66   :  { %946 = vmatpush.bf16.msra.mxu3 %v1481_v15  ;;  %814 = vmatpush.xpose.msra.mxu1 %v720_v1 }
  0x67   :  { %863 = vmatpush.msra.mxu2 %v720_v1 }
  0x68   :  { %787 = vmatpush.bf16.msra.mxu0 %v1472_v13 }
  0x6a   :  { %947 = vmatpush.bf16.msra.mxu3 %v1480_v18 }
  0x6c   :  { %788 = vmatpush.bf16.msra.mxu0 %v1471_v14 }
  0x6e   :  { %948 = vmatpush.bf16.msra.mxu3 %v1479_v26 }
  0x70   :  { %789 = vmatpush.bf16.msra.mxu0 %v1470_v17 }
  0x72   :  { %949 = vmatpush.bf16.msra.mxu3 %v1478_v32  ;;  %v871_v32 = vld [vmem:[#allocation2] sm:$0x1] }
  0x74   :  { %790 = vmatpush.bf16.msra.mxu0 %v1469_v24 }
  0x76   :  { %950 = vmatpush.bf16.msra.mxu3 %v1477_v38  ;;  %v897_v38 = vld [vmem:[%s1995_s9] sm:$0x1]  ;;  %s1845_s9 = smov [#allocation18]  }
  0x77   :  { %s1012_s15 = sshll.u32 %s1845_s9, 4  ;;  %s1013_s15 = int_to_ptr.vmem [resolvable:$true] %s1012_s15 }
  0x78   :  { %791 = vmatpush.bf16.msra.mxu0 %v1468_v30 }
  0x7a   :  { %951 = vmatpush.bf16.msra.mxu3 %v1476_v43  ;;  %v1842_v43 = vmov -inf  }
  0x7b   :  { %875 = vst.msk [vmem:[#allocation3] sm:$0x1] %vm874_vm15, %v1842_v43 }
  0x7c   :  { %792 = vmatpush.bf16.msra.mxu0 %v1467_v35 }
  0x7e   :  { %952 = vmatpush.bf16.msra.mxu3 %v1475_v53 }
  0x80   :  { %793 = vmatpush.bf16.msra.mxu0 %v1466_v42 }
  0x82   :  { %953 = vmatpush.bf16.msra.mxu3 %v1474_v54 }
  0xc0   :  { %v388_v4 = vpop.f32.mrf.mxu0 }
  0xc1   :  { %v401_v5 = vpop.f32.mrf.mxu1 }
  0xc8   :  { %v427_v6 = vpop.f32.mrf.mxu3  ;;  %v390_v7 = vpop.f32.mrf.mxu0 }
  0xc9   :  { %v403_v9 = vpop.f32.mrf.mxu1 }
  0xca   :  { %v414_v8 = vpop.f32.mrf.mxu2 }
  0xd0   :  { %v429_v11 = vpop.f32.mrf.mxu3 }
  0xd2   :  { %v416_v12 = vpop.f32.mrf.mxu2 }
  0xd3   :  { %v153_v12 = vld [vmem:[%s1988_s2] sm:$0x1] }
  0xe0   :  { %v600_v20 = vpop.f32.mrf.mxu0 }
  0xe1   :  { %v601_v22 = vadd.f32 %v600_v20, %v388_v4  ;;  %v613_v23 = vpop.f32.mrf.mxu1 }
  0xe2   :  { %v614_v25 = vadd.f32 %v613_v23, %v401_v5 }
  0xe3   :  { %v653_v27 = vadd.f32 %v645_v19, %v601_v22 }
  0xe4   :  { %v654_v28 = vadd.f32 %v646_v21, %v614_v25 }
  0xe5   :  { %v1334_v29 = vmul.f32 -1.442695, %v653_v27 }
  0xe6   :  { %v1335_v31 = vmul.f32 -1.442695, %v654_v28 }
  0xe7   :  { %1503 = vpow2.f32 %v1334_v29 }
  0xe8   :  { %v626_v33 = vpop.f32.mrf.mxu2  ;;  %1505 = vpow2.f32 %v1335_v31  ;;  %v639_v36 = vpop.f32.mrf.mxu3 }
  0xe9   :  { %v602_v37 = vpop.f32.mrf.mxu0  ;;  %v640_v39 = vadd.f32 %v639_v36, %v427_v6  ;;  %v615_v40 = vpop.f32.mrf.mxu1  ;;  %v627_v51 = vadd.f32 %v626_v33, %v414_v8 }
  0xeb   :  { %v656_v41 = vadd.f32 %v648_v34, %v640_v39  ;;  %v655_v57 = vadd.f32 %v647_v52, %v627_v51 }
  0xed   :  { %v1504_v44 = vpop.eup %1503  ;;  %v1336_v45 = vmul.f32 -1.442695, %v656_v41 }
  0xee   :  { %v1506_v46 = vpop.eup %1505  ;;  %v660_v47 = vadd.f32 1.0, %v1504_v44  ;;  %v1843_v44 = vmov 0  }
  0xef   :  { %v679_v48 = vadd.f32 1.0, %v1506_v46  ;;  %1507 = vpow2.f32 %v1336_v45  ;;  %1501 = vset.pattern.permute.xlu1 %v1843_v44  ;;  %1502 = vset.pattern.permute.xlu0 %v1843_v44  ;;  %v1844_v45 = vmov 0.0  }
  0xf0   :  { %v628_v49 = vpop.f32.mrf.mxu2  ;;  %1509 = vrcp.f32 %v660_v47  ;;  %v641_v50 = vpop.f32.mrf.mxu3  ;;  %v672_v0 = vand.u32 2147483648, %v660_v47  ;;  %v670_v4 = vand.u32 2147483647, %v660_v47  ;;  %vm666_vm2 = vweird.f32 %v660_v47  ;;  %876 = vst.msk [vmem:[#allocation4] sm:$0x1] %vm874_vm15, %v1844_v45 }
  0xf1   :  { %1511 = vrcp.f32 %v679_v48  ;;  %v691_v2 = vand.u32 2147483648, %v679_v48  ;;  %v689_v6 = vand.u32 2147483647, %v679_v48  ;;  %vm685_vm3 = vweird.f32 %v679_v48 }
  0xf2   :  { %v673_v9 = vor.u32 1.1754944e-38, %v672_v0  ;;  %vm671_vm6 = vcmp.eq.f32.partialorder %v670_v4, 8.507059e+37 }
  0xf3   :  { %v692_v11 = vor.u32 1.1754944e-38, %v691_v2  ;;  %vm690_vm7 = vcmp.eq.f32.partialorder %v689_v6, 8.507059e+37 }
  0xf5   :  { %v1508_v55 = vpop.eup %1507 }
  0xf6   :  { %v1510_v56 = vpop.eup %1509  ;;  %v699_v58 = vadd.f32 1.0, %v1508_v55 }
  0xf7   :  { %v1512_v59 = vpop.eup %1511  ;;  %v662_v60 = vmul.f32 %v1510_v56, %v660_v47  ;;  %vm667_vm0 = vweird.f32 %v1510_v56  ;;  %v966_v2 = vld [vmem:[#allocation4] sm:$0x1] }
  0xf8   :  { %v681_v61 = vmul.f32 %v1512_v59, %v679_v48  ;;  %1513 = vrcp.f32 %v699_v58  ;;  %vm686_vm1 = vweird.f32 %v1512_v59  ;;  %vm668_vm4 = vmor %vm666_vm2, %vm667_vm0  ;;  %v711_v25 = vand.u32 2147483648, %v699_v58  ;;  %v964_v48 = vld [vmem:[#allocation3] sm:$0x1] }
  0xf9   :  { %v663_v62 = vsub.f32 1.0, %v662_v60  ;;  %1515 = vtanh.f32 %v655_v57  ;;  %vm687_vm5 = vmor %vm685_vm3, %vm686_vm1  ;;  %vm705_vm9 = vweird.f32 %v699_v58  ;;  %v709_v26 = vand.u32 2147483647, %v699_v58 }
  0xfa   :  { %v682_v63 = vsub.f32 1.0, %v681_v61  ;;  %v712_v28 = vor.u32 1.1754944e-38, %v711_v25  ;;  %vm819_vm0 = vcmask 57344  }
  0xfb   :  { %v664_v3 = vmul.f32 %v1510_v56, %v663_v62  ;;  %vm710_vm11 = vcmp.eq.f32.partialorder %v709_v26, 8.507059e+37 }
  0xfc   :  { %v683_v5 = vmul.f32 %v1512_v59, %v682_v63 }
  0xfd   :  { %v665_v7 = vadd.f32 %v1510_v56, %v664_v3 }
  0xfe   :  { %v1514_v8 = vpop.eup %1513  ;;  %v684_v10 = vadd.f32 %v1512_v59, %v683_v5 }
  0xff   :  { %v669_v13 = vsel %vm668_vm4, %v1510_v56, %v665_v7  ;;  %v701_v14 = vmul.f32 %v1514_v8, %v699_v58  ;;  %v1516_v15 = vpop.eup %1515  ;;  %vm706_vm8 = vweird.f32 %v1514_v8 }
 0x100   :  { %v674_v16 = vsel %vm671_vm6, %v673_v9, %v669_v13  ;;  %v688_v17 = vsel %vm687_vm5, %v1512_v59, %v684_v10  ;;  %vm707_vm10 = vmor %vm705_vm9, %vm706_vm8  ;;  %vm844_vm5 = vcmask 64512  }
 0x101   :  { %v693_v18 = vsel %vm690_vm7, %v692_v11, %v688_v17  ;;  %v716_v19 = vmul.f32 %v1516_v15, %v674_v16  ;;  %v702_v20 = vsub.f32 1.0, %v701_v14 }
 0x102   :  { %v715_v21 = vmul.f32 %v693_v18, %v153_v12 }
 0x103   :  { %v703_v22 = vmul.f32 %v1514_v8, %v702_v20 }
 0x104   :  { %v717_v23 = vadd.f32 %v716_v19, %v715_v21 }
 0x105   :  { %v704_v24 = vadd.f32 %v1514_v8, %v703_v22 }
 0x106   :  { %1517 = vtanh.f32 %v717_v23  ;;  %878 = vst [vmem:[#allocation23] sm:$0x1] %v717_v23 }
 0x107   :  { %v708_v27 = vsel %vm707_vm10, %v1514_v8, %v704_v24 }
 0x108   :  { %v713_v30 = vsel %vm710_vm11, %v712_v28, %v708_v27 }
 0x10c   :  { %v1518_v29 = vpop.eup %1517 }
 0x10d   :  { %v719_v31 = vmul.f32 %v1518_v29, %v713_v30 }
 0x10f   :  { %v721_v33 = vpack.c.bf16 %v719_v31, %v719_v31  ;;  %877 = vst [vmem:[#allocation21] sm:$0x1] %v719_v31 }
 0x110   :  { %1039 = dma.vmem_to_hbm [thread:$0]  %s1035_s20, 16, %s1037_s22, [#allocation22]  }
 0x111   :  { %794 = vmatmul.bf16.vlgmr.msra.gmra.mxu0 %v721_v33  ;;  %v872_v34 = vsel %vm870_vm14, %v721_v33, %v871_v32  ;;  %1050 = dma.vmem_to_hbm [thread:$0]  %s1046_s29, 16, %s1048_s28, [#allocation22]  }
 0x112   :  { %873 = vst [vmem:[#allocation2] sm:$0x1] %v872_v34 }
 0x119   :  { %v880_v35 = vld [vmem:[#allocation2] sm:$0x1] }
 0x11a   :  { %954 = vmatmul.bf16.vlgmr.msra.gmra.mxu3 %v880_v35 }
 0x18e   :  { %v795_v36 = vpop.f32.mrf.mxu0 }
 0x18f   :  { %815 = vmatmul.f32.vlgmr.msra.gmra.mxu1 %v795_v36 }
 0x196   :  { %v797_v37 = vpop.f32.mrf.mxu0 }
 0x19d   :  { %v955_v39 = vpop.f32.mrf.mxu3 }
 0x19e   :  { %v956_v40 = vadd.f32 %v955_v39, %v897_v38 }
 0x1a0   :  { %959 = vst [vmem:[#allocation17] sm:$0x1] %v956_v40  ;;  %v961_v41 = vsel %vm868_vm12, %v956_v40, -inf }
 0x1a1   :  { %962 = vmax.xlane.f32.xlu1 %v961_v41  ;;  %1006 = dma.vmem_to_hbm [thread:$0]  %s1002_s0, 16, %s1004_s27, [#allocation7]  }
 0x1a5   :  { %v957_v42 = vpop.f32.mrf.mxu3 }
 0x20c   :  { %v816_v46 = vpop.f32.mrf.mxu1 }
 0x20d   :  { %v820_v47 = vsel %vm819_vm0, %v816_v46, -inf }
 0x20e   :  { %821 = vmax.xlane.f32.xlu0 %v820_v47 }
 0x214   :  { %v963_v49 = vpop.xlane.xlu1 %962 }
 0x215   :  { %v965_v50 = vmax.f32 %v964_v48, %v963_v49 }
 0x217   :  { %v967_v51 = vsub.f32 %v964_v48, %v965_v50  ;;  %986 = vst.msk [vmem:[#allocation3] sm:$0x1] %vm874_vm15, %v965_v50  ;;  %973 = vperm.xlu1 %1501, %v965_v50  }
 0x219   :  { %v968_v63 = vmul.f32 1.442695, %v967_v51 }
 0x21e   :  { %v990_v20 = vld [vmem:[#allocation3] sm:$0x1] }
 0x281   :  { %v822_v52 = vpop.xlane.xlu0 %821 }
 0x282   :  { %v823_v53 = vsub.f32 %v816_v46, %v822_v52 }
 0x284   :  { %v824_v54 = vmul.f32 1.442695, %v823_v53 }
 0x286   :  { %1519 = vpow2.f32 %v824_v54 }
 0x289   :  { %v974_v55 = vpop.permute.xlu1 %973 }
 0x28a   :  { %v976_v56 = vperm.slane %v974_v55, 0 }
 0x28c   :  { %v1520_v57 = vpop.eup %1519  ;;  %v977_v58 = vsub.f32 %v956_v40, %v976_v56 }
 0x28d   :  { %v826_v59 = vsel %vm819_vm0, %v1520_v57, 0.0 }
 0x28e   :  { %v978_v60 = vmul.f32 1.442695, %v977_v58  ;;  %827 = vadd.xlane.f32.xlu0 %v826_v59 }
 0x290   :  { %1521 = vpow2.f32 %v978_v60 }
 0x291   :  { %1523 = vpow2.f32 %v968_v63 }
 0x296   :  { %v1522_v61 = vpop.eup %1521 }
 0x297   :  { %v980_v62 = vsel %vm868_vm12, %v1522_v61, 0.0  ;;  %v1524_v1 = vpop.eup %1523 }
 0x298   :  { %981 = vadd.xlane.f32.xlu2 %v980_v62  ;;  %v970_v5 = vmul.f32 %v1524_v1, %v966_v2 }
 0x301   :  { %v828_v0 = vpop.xlane.xlu0 %827 }
 0x302   :  { %1525 = vrcp.f32 %v828_v0  ;;  %v840_v8 = vand.u32 2147483648, %v828_v0  ;;  %v838_v11 = vand.u32 2147483647, %v828_v0  ;;  %vm834_vm2 = vweird.f32 %v828_v0 }
 0x304   :  { %v841_v13 = vor.u32 1.1754944e-38, %v840_v8  ;;  %vm839_vm4 = vcmp.eq.f32.partialorder %v838_v11, 8.507059e+37 }
 0x308   :  { %v1526_v3 = vpop.eup %1525 }
 0x309   :  { %v830_v4 = vmul.f32 %v1526_v3, %v828_v0  ;;  %vm835_vm1 = vweird.f32 %v1526_v3 }
 0x30a   :  { %vm836_vm3 = vmor %vm834_vm2, %vm835_vm1 }
 0x30b   :  { %v831_v6 = vsub.f32 1.0, %v830_v4  ;;  %v982_v7 = vpop.xlane.xlu2 %981 }
 0x30c   :  { %v983_v9 = vadd.f32 %v982_v7, %v970_v5 }
 0x30d   :  { %v832_v10 = vmul.f32 %v1526_v3, %v831_v6 }
 0x30e   :  { %985 = vst.msk [vmem:[#allocation4] sm:$0x1] %vm874_vm15, %v983_v9 }
 0x30f   :  { %v833_v12 = vadd.f32 %v1526_v3, %v832_v10 }
 0x311   :  { %v837_v14 = vsel %vm836_vm3, %v1526_v3, %v833_v12 }
 0x312   :  { %v842_v15 = vsel %vm839_vm4, %v841_v13, %v837_v14 }
 0x313   :  { %v843_v16 = vmul.f32 %v1520_v57, %v842_v15 }
 0x315   :  { %1369 = vmatmul.msk.f32.vlgmr.msra.gmra.mxu2 %vm844_vm5, %v843_v16  ;;  %v991_v17 = vld [vmem:[#allocation4] sm:$0x1] }
 0x316   :  { %1527 = vlog2.f32 %v991_v17 }
 0x31c   :  { %v1528_v18 = vpop.eup %1527 }
 0x31d   :  { %v993_v19 = vmul.f32 0.6931472, %v1528_v18 }
 0x31f   :  { %v994_v21 = vadd.f32 %v993_v19, %v990_v20 }
 0x321   :  { %995 = vst.msk [vmem:[#allocation18] sm:$0x1] %vm874_vm15, %v994_v21 }
 0x322   :  { %1017 = dma.vmem_to_hbm [thread:$0]  %s1013_s15, 16, %s1015_s18, [#allocation19]  }
 0x398   :  { %v865_v22 = vpop.f32.mrf.mxu2 }
 0x399   :  { %879 = vst [vmem:[#allocation20] sm:$0x1] %v865_v22 }
 0x39a   :  { %1028 = dma.vmem_to_hbm [thread:$0]  %s1024_s10, 16, %s1026_s8, [#allocation19]  }
 0x39b   :  { %1825 = dma.done.wait [#allocation7], 16  }
 0x39c   :  { %1826 = vsyncadd [#allocation7], 4294967280 }
 0x39d   :  { %1827 = dma.done.wait [#allocation19], 32  }
 0x39e   :  { %1828 = vsyncadd [#allocation19], 4294967264 }
 0x39f   :  { %1829 = dma.done.wait [#allocation22], 32  }
 0x3a0   :  { %1830 = vsyncadd [#allocation22], 4294967264 }
 0x3a1   :  { %1071 = vsyncpa [#allocation6], 1 }
 0x3a2   :  { %1072 = vsyncpa [#allocation9], 1 }
 0x3a3   :  { %1073 = vsyncpa [#allocation12], 1 }
 0x3a4   :  { %1074 = vsyncpa [#allocation15], 1 }
 0x3a5   :  { %1075 = vsyncpa [#allocation7], 1 }
 0x3a6   :  { %1076 = vsyncpa [#allocation19], 1 }
 0x3a7   :  { %1077 = vsyncpa [#allocation22], 1 }

</bundles_post_ra>
